<compile_context>
chip_gen: v7x
topology: tpu7x:2x2x1
jax: 0.10.0
libtpu: 0.0.40
codegen_flags: <defaults>
</compile_context>

<pallas_src>
import functools

import jax
import jax.numpy as jnp
from jax.experimental import pallas as pl
from jax.experimental.pallas import tpu as pltpu


# ----------------------------- Pallas kernel ------------------------------ #

def _softplus(z):
    # Numerically stable softplus, matches torch.nn.functional.softplus
    # (the threshold=20 shortcut differs by <1e-9 in f32).
    return jnp.maximum(z, 0.0) + jnp.log1p(jnp.exp(-jnp.abs(z)))


def _knet_mlp_kernel(xT_ref, w1_ref, b1_ref, w2_ref, b2_ref, oT_ref, *, d_out):
    # xT_ref: (D_IN, TB)   input tile, batch on lanes
    # w1_ref: (H, D_IN)    first nn.Linear weight (native PyTorch layout)
    # b1_ref: (H, 1)       first bias (column, broadcast over lanes)
    # w2_ref: (H, D_OUT)   last nn.Linear weight, transposed
    # b2_ref: (D_OUT, 1)   last bias (includes +k_init)
    # oT_ref: (D_OUT, TB)  output tile, batch on lanes (lane-dense store)
    x = xT_ref[...]
    # First linear on the MXU with a full lane-wide N (= batch) dimension.
    h = jnp.dot(w1_ref[...], x, preferred_element_type=jnp.float32) + b1_ref[...]
    h = jnp.tanh(h)                                    # hid_nonliear (f32, EUP)
    if d_out == 1:
        # Degenerate N=1 second linear: VPU multiply + feature (sublane) reduce
        # instead of a 1-column MXU matmul.
        z = jnp.sum(h * w2_ref[...], axis=0, keepdims=True) + b2_ref[...]
    else:
        z = jax.lax.dot_general(
            w2_ref[...], h, dimension_numbers=(((0,), (0,)), ((), ())),
            preferred_element_type=jnp.float32) + b2_ref[...]
    oT_ref[...] = _softplus(z).astype(oT_ref.dtype)    # out_nonliear


@functools.partial(jax.jit, static_argnames=("tile_b", "input_dtype"))
def knet_mlp_forward(x, w1, b1, w2, b2, *, tile_b=512, input_dtype=None):
    """K_net forward (global_lips=False) via a Pallas TPU kernel.

    x : (B, d_in)   inputs, PyTorch (N, in_features) convention.
    w1: (H, d_in)   first nn.Linear weight (PyTorch layout).
    b1: (H,)        first nn.Linear bias.
    w2: (d_out, H)  last nn.Linear weight (PyTorch layout).
    b2: (d_out,)    last nn.Linear bias (k_init already folded in).
    input_dtype: optional cast for x / w1 (e.g. jnp.bfloat16 on v6e/v7x);
                 accumulation and activations stay f32 (v5e-safe).
    Returns (B, d_out) float32.
    """
    B, d_in = x.shape
    H = w1.shape[0]
    d_out = w2.shape[0]

    # Lane-dense layout: batch on the last (lane) axis everywhere.
    xT = x.T                           # (d_in, B)
    w2T = w2.T                         # (H, d_out)
    b1c = b1.reshape(H, 1).astype(jnp.float32)
    b2c = b2.reshape(d_out, 1).astype(jnp.float32)

    if input_dtype is not None:
        xT = xT.astype(input_dtype)
        w1 = w1.astype(input_dtype)

    # One big tile for small batches (grid=(1,)); otherwise 128-aligned lane
    # tiles with batch padding so ragged batch sizes are handled.
    if B <= tile_b:
        tb, Bp = B, B
    else:
        assert tile_b % 128 == 0, "tile_b must be a multiple of 128 (lane width)"
        tb = tile_b
        Bp = pl.cdiv(B, tb) * tb
        if Bp != B:
            xT = jnp.pad(xT, ((0, 0), (0, Bp - B)))
    grid = (Bp // tb,)

    outT = pl.pallas_call(
        functools.partial(_knet_mlp_kernel, d_out=d_out),
        out_shape=jax.ShapeDtypeStruct((d_out, Bp), jnp.float32),
        grid_spec=pltpu.PrefetchScalarGridSpec(
            num_scalar_prefetch=0,
            grid=grid,
            in_specs=[
                pl.BlockSpec((d_in, tb), lambda i: (0, i)),
                pl.BlockSpec((H, d_in), lambda i: (0, 0)),
                pl.BlockSpec((H, 1), lambda i: (0, 0)),
                pl.BlockSpec((H, d_out), lambda i: (0, 0)),
                pl.BlockSpec((d_out, 1), lambda i: (0, 0)),
            ],
            out_specs=pl.BlockSpec((d_out, tb), lambda i: (0, i)),
        ),
        compiler_params=pltpu.CompilerParams(
            dimension_semantics=("parallel",) if grid[0] > 1 else ("arbitrary",)),
    )(xT, w1, b1c, w2T, b2c)

    # Back to the PyTorch (B, d_out) convention; drop batch padding.
    # TODO(synk): if this feeds full LipsNet (k * f(x) / ||Jf||), fuse that
    # scale into this kernel / let XLA fuse instead of a standalone call.
    return outT.T[:B]


def knet_global_forward(k_scalar, batch):
    """K_net forward (global_lips=True): softplus(k).repeat(B).unsqueeze(1).

    Pure scalar broadcast -> plain JAX glue (no meaningful kernel hot path).
    """
    k = jnp.maximum(k_scalar, 0.0) + jnp.log1p(jnp.exp(-jnp.abs(k_scalar)))
    return jnp.broadcast_to(k, (batch,))[:, None]


# ------------------------- deterministic params ---------------------------- #

def init_knet_params(key, sizes, k_init):
    """Deterministic synthetic init mirroring mlp()'s layouts.

    sizes = [d_in, hidden, d_out].  Weights are kept in PyTorch's native
    nn.Linear layout (out_features, in_features); both layers get xavier-normal
    scale (Tanh / Softplus hit the `else` branch of mlp's init), and k_init is
    added to the last bias (as in K_net.__init__).
    """
    d_in, hid, d_out = sizes
    k1, k2 = jax.random.split(key)
    w1 = jax.random.normal(k1, (hid, d_in), jnp.float32) * (2.0 / (d_in + hid)) ** 0.5
    b1 = jnp.zeros((hid,), jnp.float32)
    w2 = jax.random.normal(k2, (d_out, hid), jnp.float32) * (2.0 / (hid + d_out)) ** 0.5
    b2 = jnp.zeros((d_out,), jnp.float32) + jnp.float32(k_init)
    return w1, b1, w2, b2


# --------------------------------- main ------------------------------------ #

if __name__ == "__main__":
    key = jax.random.PRNGKey(0)
    kx, kp, kx2 = jax.random.split(key, 3)

    # Small shapes consistent with K_net: sizes = [obs_dim, hidden, 1]
    D_IN, HID, D_OUT = 16, 64, 1
    k_init = 1.0
    w1, b1, w2, b2 = init_knet_params(kp, [D_IN, HID, D_OUT], k_init)

    def ref_forward(xr, w1r):
        hh = jnp.tanh(xr @ w1r.T + b1)
        zz = hh @ w2.T + b2
        return jnp.maximum(zz, 0.0) + jnp.log1p(jnp.exp(-jnp.abs(zz)))

    # --- small batch, f32: single tile, grid=(1,) ---
    B = 64
    x = jax.random.normal(kx, (B, D_IN), jnp.float32)
    out = jax.block_until_ready(knet_mlp_forward(x, w1, b1, w2, b2))
    assert out.shape == (B, D_OUT)
    assert jnp.allclose(out, ref_forward(x, w1), atol=1e-5, rtol=1e-5)

    # --- larger ragged batch, bf16 MXU inputs (v6e/v7x fast path) ---
    B2 = 1000
    x2 = jax.random.normal(kx2, (B2, D_IN), jnp.float32)
    out2 = jax.block_until_ready(
        knet_mlp_forward(x2, w1, b1, w2, b2, tile_b=512, input_dtype=jnp.bfloat16))
    x2_r = x2.astype(jnp.bfloat16).astype(jnp.float32)
    w1_r = w1.astype(jnp.bfloat16).astype(jnp.float32)
    assert out2.shape == (B2, D_OUT)
    assert jnp.allclose(out2, ref_forward(x2_r, w1_r), atol=1e-4, rtol=1e-4)

    # --- global branch (scalar softplus broadcast), plain JAX glue ---
    out_g = jax.block_until_ready(knet_global_forward(jnp.float32(k_init), B))
    assert out_g.shape == (B, 1)

    print("KERNEL_OK")
</pallas_src>

<mosaic_0001>
module attributes {stable_mosaic.version = 11 : i64} {
  func.func @_knet_mlp_kernel(%arg0: i32, %arg1: memref<16x64xf32, #tpu.memory_space<vmem>>, %arg2: memref<64x16xf32, #tpu.memory_space<vmem>>, %arg3: memref<64x1xf32, #tpu.memory_space<vmem>>, %arg4: memref<64x1xf32, #tpu.memory_space<vmem>>, %arg5: memref<1x1xf32, #tpu.memory_space<vmem>>, %arg6: memref<1x64xf32, #tpu.memory_space<vmem>>) attributes {dimension_semantics = [#tpu.dimension_semantics<arbitrary>], iteration_bounds = array<i64: 1>, scalar_prefetch = 0 : i64, scratch_operands = 0 : i64, tpu.core_type = #tpu.core_type<tc>, window_params = [{transform_indices = @transform_0, window_bounds = array<i64: 16, 64>}, {pipeline_mode = #tpu.pipeline_mode<synchronous>, transform_indices = @transform_1, window_bounds = array<i64: 64, 16>}, {pipeline_mode = #tpu.pipeline_mode<synchronous>, transform_indices = @transform_2, window_bounds = array<i64: 64, 1>}, {pipeline_mode = #tpu.pipeline_mode<synchronous>, transform_indices = @transform_3, window_bounds = array<i64: 64, 1>}, {pipeline_mode = #tpu.pipeline_mode<synchronous>, transform_indices = @transform_4, window_bounds = array<i64: 1, 1>}, {transform_indices = @transform_5, window_bounds = array<i64: 1, 64>}]} {
    %c0 = arith.constant 0 : index
    %c0_0 = arith.constant 0 : index
    %0 = vector.load %arg1[%c0, %c0_0] : memref<16x64xf32, #tpu.memory_space<vmem>>, vector<16x64xf32>
    %c0_1 = arith.constant 0 : index
    %c0_2 = arith.constant 0 : index
    %1 = vector.load %arg2[%c0_1, %c0_2] : memref<64x16xf32, #tpu.memory_space<vmem>>, vector<64x16xf32>
    %cst = arith.constant dense<0.000000e+00> : vector<64x64xf32>
    %2 = tpu.matmul %1, %0, %cst {dimension_numbers = #tpu.dot_dimension_numbers<[1], [0], [0], [1], [0, 0, 1, 1], [], []>} : vector<64x16xf32>, vector<16x64xf32>, vector<64x64xf32> -> vector<64x64xf32>
    %c0_3 = arith.constant 0 : index
    %c0_4 = arith.constant 0 : index
    %3 = vector.load %arg3[%c0_3, %c0_4] : memref<64x1xf32, #tpu.memory_space<vmem>>, vector<64x1xf32>
    %4 = vector.broadcast %3 : vector<64x1xf32> to vector<64x64xf32>
    %5 = arith.addf %2, %4 : vector<64x64xf32>
    %6 = math.tanh %5 : vector<64x64xf32>
    %c0_5 = arith.constant 0 : index
    %c0_6 = arith.constant 0 : index
    %7 = vector.load %arg4[%c0_5, %c0_6] : memref<64x1xf32, #tpu.memory_space<vmem>>, vector<64x1xf32>
    %8 = vector.broadcast %7 : vector<64x1xf32> to vector<64x64xf32>
    %9 = arith.mulf %6, %8 : vector<64x64xf32>
    %cst_7 = arith.constant dense<0.000000e+00> : vector<64xf32>
    %10 = vector.multi_reduction <add>, %9, %cst_7 [0] : vector<64x64xf32> to vector<64xf32>
    %11 = vector.shape_cast %10 : vector<64xf32> to vector<1x64xf32>
    %c0_8 = arith.constant 0 : index
    %c0_9 = arith.constant 0 : index
    %12 = vector.load %arg5[%c0_8, %c0_9] : memref<1x1xf32, #tpu.memory_space<vmem>>, vector<1x1xf32>
    %13 = vector.broadcast %12 : vector<1x1xf32> to vector<1x64xf32>
    %14 = arith.addf %11, %13 : vector<1x64xf32>
    %cst_10 = arith.constant 0.000000e+00 : f32
    %15 = vector.broadcast %cst_10 : f32 to vector<1x64xf32>
    %16 = arith.maximumf %14, %15 : vector<1x64xf32>
    %17 = math.absf %14 : vector<1x64xf32>
    %cst_11 = arith.constant 0.000000e+00 : f32
    %18 = vector.broadcast %cst_11 : f32 to vector<1x64xf32>
    %19 = arith.subf %18, %17 : vector<1x64xf32>
    %20 = math.exp %19 : vector<1x64xf32>
    %21 = math.log1p %20 : vector<1x64xf32>
    %22 = arith.addf %16, %21 : vector<1x64xf32>
    %c0_12 = arith.constant 0 : index
    %c0_13 = arith.constant 0 : index
    %23 = vector.load %arg6[%c0_12, %c0_13] : memref<1x64xf32, #tpu.memory_space<vmem>>, vector<1x64xf32>
    tpu.vector_store %arg6[%c0_12, %c0_13], %22 {strides = array<i32>} : memref<1x64xf32, #tpu.memory_space<vmem>>, vector<1x64xf32>,
    return
  }
  func.func @transform_0(%arg0: i32) -> (i32, i32) {
    %c0_i32 = arith.constant 0 : i32
    %c0_i32_0 = arith.constant 0 : i32
    return %c0_i32, %arg0 : i32, i32
  }
  func.func @transform_1(%arg0: i32) -> (i32, i32) {
    %c0_i32 = arith.constant 0 : i32
    %c0_i32_0 = arith.constant 0 : i32
    %c0_i32_1 = arith.constant 0 : i32
    return %c0_i32, %c0_i32_0 : i32, i32
  }
  func.func @transform_2(%arg0: i32) -> (i32, i32) {
    %c0_i32 = arith.constant 0 : i32
    %c0_i32_0 = arith.constant 0 : i32
    %c0_i32_1 = arith.constant 0 : i32
    return %c0_i32, %c0_i32_0 : i32, i32
  }
  func.func @transform_3(%arg0: i32) -> (i32, i32) {
    %c0_i32 = arith.constant 0 : i32
    %c0_i32_0 = arith.constant 0 : i32
    %c0_i32_1 = arith.constant 0 : i32
    return %c0_i32, %c0_i32_0 : i32, i32
  }
  func.func @transform_4(%arg0: i32) -> (i32, i32) {
    %c0_i32 = arith.constant 0 : i32
    %c0_i32_0 = arith.constant 0 : i32
    %c0_i32_1 = arith.constant 0 : i32
    return %c0_i32, %c0_i32_0 : i32, i32
  }
  func.func @transform_5(%arg0: i32) -> (i32, i32) {
    %c0_i32 = arith.constant 0 : i32
    %c0_i32_0 = arith.constant 0 : i32
    return %c0_i32, %arg0 : i32, i32
  }
}

</mosaic_0001>

<bundles_post_ra>
// kernel: knet_mlp_forward.1
= control target key start
LH: loop header
LB: loop body
LE: loop exit
PB: predicated region body
PF: predicated region fallthrough
CT: control target
= control target key end

     0   :  { %s568_s0 = inlined_call_operand.vmem [shape: f32[16,64], index: 0, kind: input, shape index: {}]   ;;  %s569_s1 = inlined_call_operand.vmem [shape: f32[64,16], index: 1, kind: input, shape index: {}]   ;;  %s570_s2 = inlined_call_operand.vmem [shape: f32[64,1], index: 2, kind: input, shape index: {}]   ;;  %s571_s3 = inlined_call_operand.vmem [shape: f32[64,1], index: 3, kind: input, shape index: {}]   ;;  %s572_s4 = inlined_call_operand.<no memory space> [shape: f32[1,1], index: 4, kind: input, shape index: {}]   ;;  %s573_s5 = inlined_call_operand.hbm [shape: f32[1,64], index: 5, kind: output, shape index: {}]  }
   0x1   :  { %v10_v0 = vstv %s572_s4 }
   0x2   :  { %11 = vst [vmem:[#allocation2] sm:$0x1] %v10_v0 }
   0x3   :  { %v23_v1 = vld [vmem:[%s568_s0] sm:$0xff]  ;;  %v24_v2 = vld [vmem:[%s568_s0 + $0x8] sm:$0xff]  ;;  %vm81_vm0 = vcmask 130048   ;;  %v427_v6 = vmov 0   ;;  %v35_v10 = vld [vmem:[%s570_s2 + $0x10] sm:$0xff] }
   0x4   :  { %v25_v3 = vld [vmem:[%s569_s1] sm:$0xff]  ;;  %v373_v4 = vpack.c.bf16 %v24_v2, %v23_v1  ;;  %381 = vset.pattern.permute.xlu0 %v427_v6  ;;  %382 = vset.pattern.permute.xlu1 %v427_v6  ;;  %v26_v8 = vld [vmem:[%s569_s1 + $0x8] sm:$0xff]  ;;  %v27_v11 = vld [vmem:[%s569_s1 + $0x10] sm:$0xff] }
   0x5   :  { %361 = vmatprep.mubr.msk.f32.mxu0 %vm81_vm0, %v25_v3  ;;  %v29_v5 = vld [vmem:[%s569_s1 + $0x20] sm:$0xff]  ;;  %v30_v9 = vld [vmem:[%s569_s1 + $0x28] sm:$0xff]  ;;  %v31_v12 = vld [vmem:[%s569_s1 + $0x30] sm:$0xff]  ;;  %53 = vperm.xlu1 %382, %v35_v10  }
   0x6   :  { %367 = vmatprep.mubr.msk.f32.mxu1 %vm81_vm0, %v29_v5  ;;  %374 = vmatprep.subr.bf16.mxu0 %v373_v4  ;;  %v33_v7 = vld [vmem:[%s570_s2] sm:$0xff]  ;;  %v34_v13 = vld [vmem:[%s570_s2 + $0x8] sm:$0xff]  ;;  %v36_v14 = vld [vmem:[%s570_s2 + $0x18] sm:$0xff] }
   0x7   :  { %377 = vmatprep.subr.bf16.mxu1 %v373_v4  ;;  %376 = vmatpush3.bf16.msra.mxu0 %v373_v4  ;;  %v28_v15 = vld [vmem:[%s569_s1 + $0x18] sm:$0xff] }
   0x8   :  { %378 = vmatpush3.bf16.msra.mxu1 %v373_v4  ;;  %43 = vperm.xlu0 %381, %v33_v7   ;;  %v32_v16 = vld [vmem:[%s569_s1 + $0x38] sm:$0xff] }
   0x9   :  { %58 = vperm.xlu1 %382, %v36_v14  }
   0xa   :  { %362 = vmatmul.mubr.msk.f32.vlgmr.msra.gmra.mrb[0].mxu0 %vm81_vm0, %v26_v8 }
   0xb   :  { %368 = vmatmul.mubr.msk.f32.vlgmr.msra.gmra.mrb[0].mxu1 %vm81_vm0, %v30_v9  ;;  %364 = vmatprep.mubr.msk.f32.mxu0 %vm81_vm0, %v27_v11 }
   0xc   :  { %370 = vmatprep.mubr.msk.f32.mxu1 %vm81_vm0, %v31_v12  ;;  %48 = vperm.xlu0 %381, %v34_v13  }
   0xd   :  { %12 = vsyncpa [#allocation4], 0  ;;  %v37_v17 = vld [vmem:[%s570_s2 + $0x20] sm:$0xff]  ;;  %v38_v18 = vld [vmem:[%s570_s2 + $0x28] sm:$0xff]  ;;  %vm275_vm1 = vcmask 523264   ;;  %vm323_vm3 = vcmask 516096  }
   0xe   :  { %365 = vmatmul.mubr.msk.f32.gmra.mrb[2].mxu0 %vm81_vm0, %v28_v15  ;;  %68 = vperm.xlu1 %382, %v38_v18   ;;  %v39_v19 = vld [vmem:[%s570_s2 + $0x30] sm:$0xff]  ;;  %v40_v20 = vld [vmem:[%s570_s2 + $0x38] sm:$0xff]  ;;  %v219_v21 = vld [vmem:[%s571_s3] sm:$0xff] }
   0xf   :  { %371 = vmatmul.mubr.msk.f32.gmra.mrb[2].mxu1 %vm81_vm0, %v32_v16  ;;  %v220_v22 = vld [vmem:[%s571_s3 + $0x8] sm:$0xff]  ;;  %v221_v23 = vld [vmem:[%s571_s3 + $0x10] sm:$0xff]  ;;  %v222_v24 = vld [vmem:[%s571_s3 + $0x18] sm:$0xff] }
  0x10   :  { %63 = vperm.xlu0 %381, %v37_v17   ;;  %v223_v25 = vld [vmem:[%s571_s3 + $0x20] sm:$0xff]  ;;  %v224_v26 = vld [vmem:[%s571_s3 + $0x28] sm:$0xff]  ;;  %v225_v27 = vld [vmem:[%s571_s3 + $0x30] sm:$0xff] }
  0x11   :  { %v226_v28 = vld [vmem:[%s571_s3 + $0x38] sm:$0xff]  ;;  %v297_v29 = vld [vmem:[#allocation2] sm:$0x1]  ;;  %s428_s3 = smov [#allocation3]  }
  0x12   :  { %78 = vperm.xlu1 %382, %v40_v20   ;;  %s331_s16 = sshll.u32 %s428_s3, 4  ;;  %s332_s16 = int_to_ptr.vmem [resolvable:$true] %s331_s16 }
  0x13   :  { %s403_s17 = scalar_lea.vmem %s332_s16, 16  ;;  %s407_s18 = scalar_lea.vmem %s332_s16, 32 }
  0x14   :  { %73 = vperm.xlu0 %381, %v39_v19   ;;  %p404_p0 = scmp.ne.s32.totalorder %s332_s16, %s403_s17  ;;  %p408_p1 = scmp.lt.s32.totalorder %s332_s16, %s332_s16 }
  0x15   :  { %p409_p2 = scmp.lt.s32.totalorder %s407_s18, %s403_s17 }
  0x16   :  { %234 = vperm.xlu1 %382, %v220_v22  }
  0x17   :  { %p410_p3 = por %p409_p2, %p408_p1 }
  0x18   :  { %229 = vperm.xlu0 %381, %v219_v21  }
  0x19   :  { %p411_p4 = pnand %p410_p3, %p404_p0 }
  0x1a   :  { %244 = vperm.xlu1 %382, %v222_v24  }
  0x1c   :  { %239 = vperm.xlu0 %381, %v221_v23  }
  0x1e   :  { %254 = vperm.xlu1 %382, %v224_v26  }
  0x20   :  { %249 = vperm.xlu0 %381, %v223_v25  }
  0x22   :  { %264 = vperm.xlu1 %382, %v226_v28   ;;  %v303_v28 = vlaneseq }
  0x24   :  { %259 = vperm.xlu0 %381, %v225_v27  }
  0x28   :  { %300 = vperm.xlu0 %381, %v297_v29  }
  0x84   :  { %v54_v31 = vpop.permute.xlu1 %53 }
  0x87   :  { %v44_v30 = vpop.permute.xlu0 %43 }
  0x88   :  { %v59_v33 = vpop.permute.xlu1 %58 }
  0x8b   :  { %v49_v32 = vpop.permute.xlu0 %48 }
  0x8d   :  { %v69_v35 = vpop.permute.xlu1 %68 }
  0x8f   :  { %v64_v34 = vpop.permute.xlu0 %63 }
  0x91   :  { %v79_v43 = vpop.permute.xlu1 %78 }
  0x93   :  { %v74_v36 = vpop.permute.xlu0 %73 }
  0x95   :  { %v235_v53 = vpop.permute.xlu1 %234 }
  0x97   :  { %v230_v51 = vpop.permute.xlu0 %229 }
  0x99   :  { %v245_v60 = vpop.permute.xlu1 %244 }
  0x9b   :  { %v240_v57 = vpop.permute.xlu0 %239 }
  0x9d   :  { %v255_v8 = vpop.permute.xlu1 %254 }
  0x9f   :  { %v250_v3 = vpop.permute.xlu0 %249 }
  0xa1   :  { %v265_v20 = vpop.permute.xlu1 %264 }
  0xa3   :  { %v260_v16 = vpop.permute.xlu0 %259 }
  0xdd   :  { %v363_v37 = vpop.f32.mrb[0].mxu0 }
  0xde   :  { %v369_v38 = vpop.f32.mrb[0].mxu1  ;;  %v178_v39 = vadd.f32 %v363_v37, %v49_v32  ;;  %v172_v40 = vpop.f32.mrb[1].mxu0 }
  0xdf   :  { %v192_v41 = vpop.f32.mrb[1].mxu1  ;;  %v173_v42 = vadd.f32 %v172_v40, %v44_v30  ;;  %v198_v52 = vadd.f32 %v369_v38, %v69_v35 }
  0xe0   :  { %383 = vtanh.f32 %v178_v39  ;;  %v193_v44 = vadd.f32 %v192_v41, %v64_v34 }
  0xe1   :  { %v366_v45 = vpop.f32.mrb[2].mxu0  ;;  %385 = vtanh.f32 %v173_v42 }
  0xe2   :  { %v372_v46 = vpop.f32.mrb[2].mxu1  ;;  %v188_v47 = vadd.f32 %v366_v45, %v59_v33  ;;  %v182_v48 = vpop.f32.mrb[3].mxu0 }
  0xe3   :  { %v202_v49 = vpop.f32.mrb[3].mxu1  ;;  %v183_v50 = vadd.f32 %v182_v48, %v54_v31  ;;  %v208_v55 = vadd.f32 %v372_v46, %v79_v43  ;;  %v304_v31 = vshrl.u32 %v303_v28, 7 }
  0xe4   :  { %387 = vtanh.f32 %v188_v47  ;;  %v203_v54 = vadd.f32 %v202_v49, %v74_v36  ;;  %v301_v36 = vpop.permute.xlu0 %300 }
  0xe5   :  { %389 = vtanh.f32 %v193_v44  ;;  %v305_v34 = vsub.s32 0, %v304_v31 }
  0xe6   :  { %391 = vtanh.f32 %v183_v50 }
  0xe7   :  { %393 = vtanh.f32 %v198_v52  ;;  %v306_v38 = vrot.slane %v301_v36, %v305_v34 }
  0xe8   :  { %395 = vtanh.f32 %v203_v54 }
  0xe9   :  { %397 = vtanh.f32 %v208_v55 }
  0xea   :  { %v384_v56 = vpop.eup %383 }
  0xeb   :  { %v268_v58 = vmul.f32 %v384_v56, %v235_v53  ;;  %v386_v59 = vpop.eup %385 }
  0xec   :  { %v267_v62 = vmul.f32 %v386_v59, %v230_v51 }
  0xed   :  { %v277_v61 = vsel %vm275_vm1, %v268_v58, 0.0 }
  0xee   :  { %v388_v63 = vpop.eup %387  ;;  %v276_v1 = vsel %vm275_vm1, %v267_v62, 0.0 }
  0xef   :  { %v390_v0 = vpop.eup %389  ;;  %v278_v4 = vadd.f32 %v277_v61, %v276_v1  ;;  %v270_v5 = vmul.f32 %v388_v63, %v245_v60 }
  0xf0   :  { %v392_v2 = vpop.eup %391  ;;  %v271_v9 = vmul.f32 %v390_v0, %v250_v3 }
  0xf1   :  { %v269_v6 = vmul.f32 %v392_v2, %v240_v57  ;;  %v394_v7 = vpop.eup %393  ;;  %v281_v14 = vsel %vm275_vm1, %v270_v5, 0.0 }
  0xf2   :  { %v396_v11 = vpop.eup %395  ;;  %v272_v13 = vmul.f32 %v394_v7, %v255_v8  ;;  %v283_v18 = vsel %vm275_vm1, %v271_v9, 0.0 }
  0xf3   :  { %v279_v10 = vsel %vm275_vm1, %v269_v6, 0.0  ;;  %v398_v15 = vpop.eup %397  ;;  %v273_v19 = vmul.f32 %v396_v11, %v260_v16 }
  0xf4   :  { %v280_v12 = vadd.f32 %v279_v10, %v278_v4  ;;  %v285_v22 = vsel %vm275_vm1, %v272_v13, 0.0  ;;  %v274_v23 = vmul.f32 %v398_v15, %v265_v20 }
  0xf5   :  { %v287_v25 = vsel %vm275_vm1, %v273_v19, 0.0 }
  0xf6   :  { %v282_v17 = vadd.f32 %v281_v14, %v280_v12  ;;  %v289_v27 = vsel %vm275_vm1, %v274_v23, 0.0 }
  0xf8   :  { %v284_v21 = vadd.f32 %v283_v18, %v282_v17 }
  0xfa   :  { %v286_v24 = vadd.f32 %v285_v22, %v284_v21 }
  0xfc   :  { %v288_v26 = vadd.f32 %v287_v25, %v286_v24 }
  0xfe   :  { %v290_v29 = vadd.f32 %v289_v27, %v288_v26 }
 0x100   :  { %v291_v30 = vrot.slane %v290_v29, 4 }
 0x102   :  { %v292_v32 = vadd.f32 %v291_v30, %v290_v29 }
 0x104   :  { %v293_v33 = vrot.slane %v292_v32, 2 }
 0x106   :  { %v294_v35 = vadd.f32 %v293_v33, %v292_v32 }
 0x108   :  { %v295_v37 = vrot.slane %v294_v35, 1 }
 0x10a   :  { %v296_v39 = vadd.f32 %v295_v37, %v294_v35 }
 0x10c   :  { %v307_v40 = vadd.f32 %v306_v38, %v296_v39 }
 0x10e   :  { %v309_v41 = vand.u32 2147483647, %v307_v40  ;;  %v308_v52 = vmax.f32 %v307_v40, 0.0 }
 0x110   :  { %v310_v42 = vsub.f32 0.0, %v309_v41 }
 0x112   :  { %v311_v43 = vmul.f32 1.442695, %v310_v42 }
 0x114   :  { %399 = vpow2.f32 %v311_v43 }
 0x11e   :  { %v400_v44 = vpop.eup %399 }
 0x11f   :  { %v313_v45 = vadd.f32 1.0, %v400_v44  ;;  %v316_v46 = vmul.f32 -0.5, %v400_v44  ;;  %v319_v48 = vand.u32 2147483647, %v400_v44 }
 0x121   :  { %401 = vlog2.f32 %v313_v45  ;;  %v317_v47 = vadd.f32 1.0, %v316_v46  ;;  %vm320_vm2 = vcmp.lt.f32.partialorder %v319_v48, 0.0004427343 }
 0x123   :  { %v318_v51 = vmul.f32 %v400_v44, %v317_v47 }
 0x12b   :  { %v402_v49 = vpop.eup %401 }
 0x12c   :  { %v315_v50 = vmul.f32 0.6931472, %v402_v49 }
 0x12e   :  { %v321_v53 = vsel %vm320_vm2, %v318_v51, %v315_v50 }
 0x12f   :  { %v322_v54 = vadd.f32 %v321_v53, %v308_v52 }
 0x131   :  { %324 = vst.msk [vmem:[#allocation3] sm:$0x1] %vm323_vm3, %v322_v54 }
 0x132   :  { %414 = shalt.err (!%p411_p4)
}
 0x133   :  { %s415_s21 = scalar_lea.hbm %s573_s5, 16 }
 0x134   :  { %p416_p5 = scmp.ne.s32.totalorder %s573_s5, %s415_s21  ;;  %p419_p6 = scmp.lt.u32.totalorder %s415_s21, %s573_s5 }
 0x136   :  { %p421_p7 = pnand %p419_p6, %p416_p5 }
 0x138   :  { %424 = shalt.err (!%p421_p7)
}
 0x139   :  { %334 = dma.vmem_to_hbm [thread:$0]  %s332_s16, 16, %s573_s5, [#allocation4]  }
 0x13a   :  { %425 = dma.done.wait [#allocation4], 16  }
 0x13b   :  { %426 = vsyncadd [#allocation4], 4294967280 }
 0x13c   :  { %338 = vsyncpa [#allocation4], 1 }

</bundles_post_ra>
